<compile_context>
chip_gen: v5e
topology: v5e:2x2
jax: 0.10.0
libtpu: 0.0.40
codegen_flags: <defaults>
</compile_context>

<pallas_src>
import jax
import jax.numpy as jnp
import numpy as np
from jax.experimental import pallas as pl
from jax.experimental.pallas import tpu as pltpu


# -----------------------------------------------------------------------------
# Fast path: the latch is a pure re-binding -> zero kernels, zero HBM traffic.
# -----------------------------------------------------------------------------
def registerfiles_forward(x, d_old):
    """q_new = d_old ; d_new = x.  Pure re-binding of references."""
    return d_old, x


# -----------------------------------------------------------------------------
# Materialized latch, variant A: in-place cross-swap (BlockSpec path).
#   output 0 (q_new = d_old's data) aliases input 0 (x's donated buffer)
#   output 1 (d_new = x's data)     aliases input 1 (d_old's donated buffer)
# -----------------------------------------------------------------------------
def _latch_swap_kernel(x_ref, d_old_ref, q_out_ref, d_out_ref):
    q_out_ref[...] = d_old_ref[...]   # q <- old d  (lands in x's buffer)
    d_out_ref[...] = x_ref[...]       # d <- new x  (lands in d_old's buffer)


# 4 MiB per tile; 2 inputs + 2 outputs, double-buffered -> 8 resident tiles
# <= 32 MiB, inside the explicit 48 MiB limit (v7x physical VMEM is 64 MiB).
_PER_TILE_BUDGET_BYTES = 4 << 20
_VMEM_LIMIT_BYTES = 48 << 20


def _sublane_multiple(itemsize):
    # Sub-32-bit dtypes pack along sublanes: 8 rows (f32), 16 (bf16), 32 (i8).
    return {4: 8, 2: 16, 1: 32}.get(int(itemsize), 8)


def _choose_block(R, C, itemsize):
    """Pick (block_shape, grid) for the in-place swap kernel (2-D state)."""
    sub = _sublane_multiple(itemsize)
    full_bytes = R * C * itemsize
    if full_bytes <= _PER_TILE_BUDGET_BYTES:
        # Single full-array block: no (sub,128) divisibility constraint and no
        # per-grid-step overhead for small register-file state.
        return (R, C), (1, 1)
    # Lane-dense tiles: keep full C if a `sub`-row slab fits the budget; only
    # split columns when unavoidable, and never below 512 lanes.
    tile_c = C
    if sub * C * itemsize > _PER_TILE_BUDGET_BYTES:
        tile_c = max(512, (_PER_TILE_BUDGET_BYTES // (sub * itemsize)) // 128 * 128)
        while C % tile_c != 0 and tile_c > 512:
            tile_c -= 128
        if C % tile_c != 0:
            tile_c = C            # keep lane-dense; rows become the tiled dim
    tile_r = max(sub, (_PER_TILE_BUDGET_BYTES // (tile_c * itemsize)) // sub * sub)
    tile_r = min(tile_r, R)
    while R % tile_r != 0:
        tile_r -= sub
    return (tile_r, tile_c), (R // tile_r, C // tile_c)


def _latch_swap(x, d_old):
    R, C = x.shape
    block, grid = _choose_block(R, C, jnp.dtype(x.dtype).itemsize)
    spec = pl.BlockSpec(block, lambda i, j: (i, j))
    # TODO(synk): on v7x, pltpu.CORE_PARALLEL on the leading grid axis would
    # split the copy across both TensorCores; "parallel" keeps it single-core.
    return pl.pallas_call(
        _latch_swap_kernel,
        out_shape=(
            jax.ShapeDtypeStruct((R, C), x.dtype),
            jax.ShapeDtypeStruct((R, C), x.dtype),
        ),
        grid_spec=pltpu.PrefetchScalarGridSpec(
            num_scalar_prefetch=0,
            grid=grid,
            in_specs=[spec, spec],
            out_specs=[spec, spec],
        ),
        # Real cross-swap (not identity copies).  Identical index maps ensure a
        # tile's input fetch always precedes the aliased output writeback.
        input_output_aliases={0: 0, 1: 1},
        compiler_params=pltpu.CompilerParams(
            dimension_semantics=("parallel", "parallel"),
            vmem_limit_bytes=_VMEM_LIMIT_BYTES,
        ),
    )(x, d_old)


# Jitted, buffer-donating entry point so the aliasing is truly in-place.
_latch_swap_donating = jax.jit(_latch_swap, donate_argnums=(0, 1))


# -----------------------------------------------------------------------------
# Materialized latch, variant B: direct HBM->HBM DMA into fresh buffers.
# No VMEM staging, no VPU vld/vst slots -> DMA/HBM roofline on v5e/v6e/v7x.
# -----------------------------------------------------------------------------
def _latch_dma_kernel(x_hbm, d_old_hbm, q_out_hbm, d_out_hbm, sem):
    cq = pltpu.make_async_copy(d_old_hbm, q_out_hbm, sem.at[0])   # q <- old d
    cd = pltpu.make_async_copy(x_hbm, d_out_hbm, sem.at[1])       # d <- new x
    cq.start()
    cd.start()
    cq.wait()
    cd.wait()


def registerfiles_latch_dma(x, d_old):
    """Materialized latch into fresh HBM buffers via direct HBM->HBM DMA."""
    any_spec = pl.BlockSpec(memory_space=pl.ANY)
    return pl.pallas_call(
        _latch_dma_kernel,
        out_shape=(
            jax.ShapeDtypeStruct(x.shape, x.dtype),
            jax.ShapeDtypeStruct(x.shape, x.dtype),
        ),
        in_specs=[any_spec, any_spec],
        out_specs=(any_spec, any_spec),
        scratch_shapes=[pltpu.SemaphoreType.DMA((2,))],
    )(x, d_old)


_latch_dma_jitted = jax.jit(registerfiles_latch_dma)


# -----------------------------------------------------------------------------
# Public materialized entry point: dispatch to the best variant per shape.
# -----------------------------------------------------------------------------
def registerfiles_latch(x, d_old):
    """Materialized latch (q_new, d_new) = (d_old, x).

    Tileable / small 2-D state -> in-place aliased cross-swap (inputs donated,
    do NOT reuse x / d_old afterwards).  Ragged-large or non-2D state -> direct
    HBM->HBM DMA copies into fresh buffers.
    """
    assert x.shape == d_old.shape and x.dtype == d_old.dtype
    itemsize = jnp.dtype(x.dtype).itemsize
    if x.ndim == 2:
        R, C = x.shape
        sub = _sublane_multiple(itemsize)
        small = R * C * itemsize <= _PER_TILE_BUDGET_BYTES
        tileable = (R % sub == 0) and (C % 128 == 0)
        if small or tileable:
            return _latch_swap_donating(x, d_old)
    return _latch_dma_jitted(x, d_old)


# ---- host-side metadata (matches the PyTorch module's cost model) ----------
def registerfiles_stats(size=16):
    # byte register (width=8) constants from `register`
    byte_area = 34.27 / 1e6
    byte_dpower = 0.00219 + 0.0103
    byte_lpower = 0.0201 / 1e3
    return {
        "area": size * byte_area,
        "dpower": size * byte_dpower,
        "lpower": size * byte_lpower,
    }


if __name__ == "__main__":
    key = jax.random.PRNGKey(0)
    k1, k2, k3, k4, k5, k6 = jax.random.split(key, 6)

    # Small register-file-like state: 16 registers, lane-dense (256 = 2*128).
    R, C = 16, 256
    x = jax.random.normal(k1, (R, C), dtype=jnp.float32)       # new input
    d_old = jax.random.normal(k2, (R, C), dtype=jnp.float32)   # latched state
    x_np, d_np = np.asarray(x), np.asarray(d_old)

    # 1) Default fast path: pure re-binding, no kernel launch, no HBM traffic.
    q_fast, d_fast = registerfiles_forward(x, d_old)
    assert q_fast is d_old and d_fast is x

    # 2) Direct HBM->HBM DMA materialization (fresh buffers, non-destructive).
    q_dma, d_dma = _latch_dma_jitted(x, d_old)
    jax.block_until_ready((q_dma, d_dma))
    assert np.array_equal(np.asarray(q_dma), d_np)
    assert np.array_equal(np.asarray(d_dma), x_np)

    # 3) In-place aliased cross-swap (inputs donated -> check via host copies).
    q_sw, d_sw = registerfiles_latch(x, d_old)
    jax.block_until_ready((q_sw, d_sw))
    assert np.array_equal(np.asarray(q_sw), d_np)
    assert np.array_equal(np.asarray(d_sw), x_np)

    # 4) bf16 state exercises the dtype-aware (16-row sublane) path.
    xb = jax.random.normal(k3, (64, 512), dtype=jnp.float32).astype(jnp.bfloat16)
    db = jax.random.normal(k4, (64, 512), dtype=jnp.float32).astype(jnp.bfloat16)
    xb_np, db_np = np.asarray(xb), np.asarray(db)
    qb, dbn = registerfiles_latch(xb, db)
    jax.block_until_ready((qb, dbn))
    assert np.array_equal(np.asarray(qb), db_np)
    assert np.array_equal(np.asarray(dbn), xb_np)

    # 5) Larger f32 state exercises the tiled path: (2048, 1024) f32 = 8 MiB
    #    -> two lane-dense 4 MiB tiles, grid (2, 1).
    x2 = jax.random.normal(k5, (2048, 1024), dtype=jnp.float32)
    d2 = jax.random.normal(k6, (2048, 1024), dtype=jnp.float32)
    x2_np, d2_np = np.asarray(x2), np.asarray(d2)
    q2, dn2 = registerfiles_latch(x2, d2)
    jax.block_until_ready((q2, dn2))
    assert np.array_equal(np.asarray(q2), d2_np)
    assert np.array_equal(np.asarray(dn2), x2_np)

    # Area/power bookkeeping is host-side scalar math (no kernel needed).
    _ = registerfiles_stats(size=16)

    print("KERNEL_OK")
</pallas_src>

<mosaic_0001>
module attributes {stable_mosaic.version = 11 : i64} {
  func.func @_latch_dma_kernel(%arg0: memref<16x256xf32, #tpu.memory_space<any>>, %arg1: memref<16x256xf32, #tpu.memory_space<any>>, %arg2: memref<16x256xf32, #tpu.memory_space<any>>, %arg3: memref<16x256xf32, #tpu.memory_space<any>>, %arg4: memref<2x!tpu.dma_semaphore, #tpu.memory_space<semaphore_mem>>) attributes {dimension_semantics = [], scalar_prefetch = 0 : i64, scratch_operands = 1 : i64, tpu.core_type = #tpu.core_type<tc>} {
    %c0_i32 = arith.constant 0 : i32
    %0 = tpu.memref_slice %arg4[%c0_i32] : memref<2x!tpu.dma_semaphore, #tpu.memory_space<semaphore_mem>> -> memref<1x!tpu.dma_semaphore, #tpu.memory_space<semaphore_mem>>
    %1 = tpu.memref_squeeze %0 : memref<1x!tpu.dma_semaphore, #tpu.memory_space<semaphore_mem>> -> memref<!tpu.dma_semaphore, #tpu.memory_space<semaphore_mem>>
    tpu.enqueue_dma source(%arg1 : memref<16x256xf32, #tpu.memory_space<any>>) target(%arg2 : memref<16x256xf32, #tpu.memory_space<any>>) target_semaphore(%1 : memref<!tpu.dma_semaphore, #tpu.memory_space<semaphore_mem>>)
    %c1_i32 = arith.constant 1 : i32
    %2 = tpu.memref_slice %arg4[%c1_i32] : memref<2x!tpu.dma_semaphore, #tpu.memory_space<semaphore_mem>> -> memref<1x!tpu.dma_semaphore, #tpu.memory_space<semaphore_mem>>
    %3 = tpu.memref_squeeze %2 : memref<1x!tpu.dma_semaphore, #tpu.memory_space<semaphore_mem>> -> memref<!tpu.dma_semaphore, #tpu.memory_space<semaphore_mem>>
    tpu.enqueue_dma source(%arg0 : memref<16x256xf32, #tpu.memory_space<any>>) target(%arg3 : memref<16x256xf32, #tpu.memory_space<any>>) target_semaphore(%3 : memref<!tpu.dma_semaphore, #tpu.memory_space<semaphore_mem>>)
    %c0_i32_0 = arith.constant 0 : i32
    %4 = tpu.memref_slice %arg4[%c0_i32_0] : memref<2x!tpu.dma_semaphore, #tpu.memory_space<semaphore_mem>> -> memref<1x!tpu.dma_semaphore, #tpu.memory_space<semaphore_mem>>
    %5 = tpu.memref_squeeze %4 : memref<1x!tpu.dma_semaphore, #tpu.memory_space<semaphore_mem>> -> memref<!tpu.dma_semaphore, #tpu.memory_space<semaphore_mem>>
    tpu.wait_dma2 semaphore(%5 : memref<!tpu.dma_semaphore, #tpu.memory_space<semaphore_mem>>) src(%arg1 : memref<16x256xf32, #tpu.memory_space<any>>) dst(%arg2 : memref<16x256xf32, #tpu.memory_space<any>>)
    %c1_i32_1 = arith.constant 1 : i32
    %6 = tpu.memref_slice %arg4[%c1_i32_1] : memref<2x!tpu.dma_semaphore, #tpu.memory_space<semaphore_mem>> -> memref<1x!tpu.dma_semaphore, #tpu.memory_space<semaphore_mem>>
    %7 = tpu.memref_squeeze %6 : memref<1x!tpu.dma_semaphore, #tpu.memory_space<semaphore_mem>> -> memref<!tpu.dma_semaphore, #tpu.memory_space<semaphore_mem>>
    tpu.wait_dma2 semaphore(%7 : memref<!tpu.dma_semaphore, #tpu.memory_space<semaphore_mem>>) src(%arg0 : memref<16x256xf32, #tpu.memory_space<any>>) dst(%arg3 : memref<16x256xf32, #tpu.memory_space<any>>)
    return
  }
}

</mosaic_0001>

<bundles_post_ra>
// kernel: registerfiles_latch_dma.1
= control target key start
LH: loop header
LB: loop body
LE: loop exit
PB: predicated region body
PF: predicated region fallthrough
CT: control target
= control target key end

     0   :  { %s62_s21 = smov [#allocation2]   ;;  %s63_s22 = smov [#allocation3]   ;;  %s99_s1 = inlined_call_operand.hbm [shape: f32[16,256], index: 1, kind: input, shape index: {}]   ;;  %s100_s2 = inlined_call_operand.hbm [shape: f32[16,256], index: 2, kind: output, shape index: {0}]   ;;  %s101_s0 = inlined_call_operand.hbm [shape: f32[16,256], index: 0, kind: input, shape index: {}]   ;;  %s102_s3 = inlined_call_operand.hbm [shape: f32[16,256], index: 3, kind: output, shape index: {1}]  }
   0x1   :  { %s13_s14 = sshll.u32 %s99_s1, 4  ;;  %s15_s17 = sshll.u32 %s100_s2, 4  ;;  %s14_s14 = int_to_ptr.hbm [resolvable:$true] %s13_s14  ;;  %s16_s17 = int_to_ptr.hbm [resolvable:$true] %s15_s17 }
   0x2   :  { %s25_s20 = sshll.u32 %s101_s0, 4  ;;  %s64_s23 = smov 0   ;;  %s26_s20 = int_to_ptr.hbm [resolvable:$true] %s25_s20 }
   0x3   :  { %19 = dma.general %s14_s14, 512, %s16_s17, %s62_s21, %s63_s22, [#allocation4], %s64_s23, 0  }
   0x4   :  { %s27_s26 = sshll.u32 %s102_s3, 4  ;;  %s65_s1 = smov [#allocation2 + $0x1]   ;;  %s28_s26 = int_to_ptr.hbm [resolvable:$true] %s27_s26 }
   0x5   :  { %s66_s27 = smov [#allocation5]  }
   0x6   :  { %31 = dma.general %s26_s20, 512, %s28_s26, %s65_s1, %s66_s27, [#allocation6], %s64_s23, 0  }
   0x7   :  { %58 = dma.done.wait [#allocation2], 512 }
   0x8   :  { %59 = vsyncadd [#allocation2], 4294966784 }
   0x9   :  { %60 = dma.done.wait [#allocation2 + $0x1], 512 }
   0xa   :  { %61 = vsyncadd [#allocation2 + $0x1], 4294966784 }
   0xb   :  { %38 = vsyncmov [#allocation2] }
   0xe   :  { %s39_s2 = vpop.sfrf %38 }
   0xf   :  { %p51_p0 = scmp.ne.s32.totalorder %s39_s2, 0 }
  0x11   :  { %43 = shalt.err (%p51_p0)  }
  0x12   :  { %45 = vsyncmov [#allocation2 + $0x1] }
  0x15   :  { %s46_s0 = vpop.sfrf %45 }
  0x16   :  { %p52_p1 = scmp.ne.s32.totalorder %s46_s0, 0 }
  0x18   :  { %50 = shalt.err (%p52_p1)  }

</bundles_post_ra>
